<compile_context>
chip_gen: v5e
topology: v5e:2x2
jax: 0.10.0
libtpu: 0.0.40
codegen_flags: <defaults>
</compile_context>

<pallas_src>
import functools

import jax
import jax.numpy as jnp
from jax.experimental import pallas as pl
from jax.experimental.pallas import tpu as pltpu


def _vq_kernel(z_ref, a_ref, zq_ref, idx_ref, sse_ref, *, distance_dtype):
    # Per grid step (one (batch, spatial-tile)):
    #   z_ref   : (1, D, tn)   input features, NCHW-native column tile
    #   a_ref   : (K, D+1)     fused codebook [e_k | -0.5*|e_k|^2]
    #                          (padded rows: zeros | -1e30, can never win)
    #   zq_ref  : (1, D, tn)   quantized output tile
    #   idx_ref : (1, 1, tn)   nearest-code indices (lane-dense store)
    #   sse_ref : (1, 1, tn)   per-position sum_D (z_q - z)^2 (lane-dense)
    z = z_ref[0].astype(jnp.float32)                         # (D, tn)
    a = a_ref[...]                                           # (K, D+1) f32
    k_pad = a.shape[0]
    d_dim, tn = z.shape

    # Append a constant ones row so the per-code bias -0.5*|e_k|^2 is folded
    # straight into the MXU contraction (no post-matmul VPU passes).
    z_aug = jnp.concatenate(
        [z, jnp.ones((1, tn), jnp.float32)], axis=0)         # (D+1, tn)

    # score[k, n] = <e_k, z_n> - 0.5*|e_k|^2 ; argmax score == argmin dist.
    score = jnp.dot(a.astype(distance_dtype), z_aug.astype(distance_dtype),
                    preferred_element_type=jnp.float32)      # (K, tn)

    # First-maximum over the codebook (sublane) axis, torch argmin style.
    s_max = jnp.max(score, axis=0, keepdims=True)            # (1, tn)
    code_iota = jax.lax.broadcasted_iota(jnp.int32, score.shape, 0)
    idx = jnp.min(
        jnp.where(score == s_max, code_iota, jnp.int32(k_pad)), axis=0)
    idx_ref[...] = idx[None, None, :].astype(jnp.int32)

    # Gather of the nearest code as a transposed-LHS contraction over K of
    # the SAME fused operand (always fp32 so z_q stays exact).
    one_hot = (code_iota == idx[None, :]).astype(jnp.float32)    # (K, tn)
    zq_aug = jax.lax.dot_general(
        a, one_hot,
        dimension_numbers=(((0,), (0,)), ((), ())),
        preferred_element_type=jnp.float32)                      # (D+1, tn)
    z_q = zq_aug[:d_dim, :]                                      # (D, tn)
    zq_ref[...] = z_q[None].astype(zq_ref.dtype)

    # Per-position squared error (safe diff^2 form); summed/scaled in wrapper.
    diff = z_q - z
    sse_ref[...] = jnp.sum(diff * diff, axis=0)[None, None, :]


def _vmem_capacity_bytes():
    # 64 MiB/TC on v7x, 128 MiB on v5e/v6e; conservative fallback if the
    # trace-time query is unavailable.
    try:
        return int(pltpu.get_tpu_info().vmem_capacity_bytes)
    except Exception:  # pragma: no cover
        return 64 * 1024 * 1024


def _pick_spatial_tile(hw, k_pad, d, max_tile, vmem_budget):
    """Largest lane-aligned spatial tile dividing hw whose working set
    (~5 live (K,tn) fp32 intermediates + double-buffered z/z_q tiles +
    the fused codebook operand) fits in `vmem_budget`."""
    fixed = 2 * k_pad * (d + 1) * 4                   # fused codebook (2 bufs)
    per_col = 4 * (5 * k_pad + 6 * (d + 1))           # intermediates + tiles
    cap = max(128, (vmem_budget - fixed) // per_col)
    cap = min(cap, max_tile)
    if hw <= cap:
        return hw
    t = (cap // 128) * 128
    while t >= 128:
        if hw % t == 0:
            return t
        t -= 128
    return hw  # full extent is always a legal block dim


@functools.partial(jax.jit,
                   static_argnames=("beta", "max_tile", "distance_dtype"))
def vector_quantizer_forward(z_nchw, codebook, beta=0.25, max_tile=1024,
                             distance_dtype=jnp.float32):
    """z_nchw: (B, C, H, W) float32, codebook: (n_e, e_dim), C == e_dim.

    Returns (z_q [B,C,H,W], codebook_loss scalar, min_indices [B,1,H,W] int32).
    """
    B, C, H, W = z_nchw.shape
    K, D = codebook.shape
    assert C == D, "channel dim must equal embedding dim"
    HW = H * W
    N = B * HW

    # NCHW-native: (B, C, H, W) -> (B, C, H*W) is a free reshape (no transpose).
    z_bdn = z_nchw.reshape(B, D, HW)

    # Fused codebook operand A = [e_k | -0.5*|e_k|^2].  Padded rows get a
    # huge negative (but finite) bias so they never win the argmax, and their
    # zero code rows contribute exactly 0 to the one-hot gather.
    codebook = codebook.astype(jnp.float32)
    c_sq = jnp.sum(codebook * codebook, axis=1, keepdims=True)       # (K, 1)
    a_op = jnp.concatenate([codebook, -0.5 * c_sq], axis=1)          # (K, D+1)
    k_pad = ((K + 7) // 8) * 8
    if k_pad != K:
        pad_rows = jnp.concatenate(
            [jnp.zeros((k_pad - K, D), jnp.float32),
             jnp.full((k_pad - K, 1), -1e30, jnp.float32)], axis=1)
        a_op = jnp.concatenate([a_op, pad_rows], axis=0)

    # Generation-aware VMEM sizing (v7x: 64 MiB/TC; v5e/v6e: 128 MiB).
    vmem_cap = _vmem_capacity_bytes()
    vmem_limit = int(min(max(vmem_cap // 2, 32 * 2**20), 100 * 2**20))
    tn = _pick_spatial_tile(HW, k_pad, D, max_tile, int(vmem_limit * 0.6))
    grid = (B, HW // tn)

    kernel = functools.partial(_vq_kernel, distance_dtype=distance_dtype)

    # NOTE: the fused codebook spec has a constant index map, so the pipeline
    # re-uses the resident copy after the first step (no per-step DMA).  Its
    # default second pipeline buffer is accepted; with codebook^T and
    # |codebook|^2 gone it is the only duplicated codebook-sized allocation.
    zq_bdn, idx_bn, sse_bn = pl.pallas_call(
        kernel,
        out_shape=(
            jax.ShapeDtypeStruct((B, D, HW), z_nchw.dtype),
            jax.ShapeDtypeStruct((B, 1, HW), jnp.int32),
            jax.ShapeDtypeStruct((B, 1, HW), jnp.float32),
        ),
        grid_spec=pltpu.PrefetchScalarGridSpec(
            num_scalar_prefetch=0,
            grid=grid,
            in_specs=[
                pl.BlockSpec((1, D, tn), lambda b, j: (b, 0, j)),      # z tile
                pl.BlockSpec((k_pad, D + 1), lambda b, j: (0, 0)),     # fused codebook
            ],
            out_specs=[
                pl.BlockSpec((1, D, tn), lambda b, j: (b, 0, j)),      # z_q tile
                pl.BlockSpec((1, 1, tn), lambda b, j: (b, 0, j)),      # indices
                pl.BlockSpec((1, 1, tn), lambda b, j: (b, 0, j)),      # SSE partials
            ],
        ),
        compiler_params=pltpu.CompilerParams(
            # No cross-step accumulator -> both axes fully parallel
            # (enables v7x megacore sharding; harmless on single-TC chips).
            dimension_semantics=("parallel", "parallel"),
            vmem_limit_bytes=vmem_limit,
        ),
    )(z_bdn, a_op)

    # codebook_loss = q_latent_loss + beta * e_latent_loss; both equal MSE(z_q, z).
    codebook_loss = (1.0 + beta) * jnp.sum(sse_bn) / jnp.float32(N * D)

    # Straight-through output z + (z_q - z) == z_q numerically; reshapes free.
    z_q = zq_bdn.reshape(B, C, H, W)
    # torch returns int64 indices; int32 is sufficient here (n_e small).
    min_indices = idx_bn.reshape(B, 1, H, W)
    return z_q, codebook_loss, min_indices


if __name__ == "__main__":
    # Small deterministic setup consistent with the module:
    #   n_e (codebook size) = 64, e_dim = 32, z of shape (2, 32, 16, 16)
    n_e, e_dim = 64, 32
    B, C, H, W = 2, e_dim, 16, 16
    beta = 0.25

    key = jax.random.PRNGKey(0)
    k_z, k_emb = jax.random.split(key)
    z = jax.random.normal(k_z, (B, C, H, W), dtype=jnp.float32)
    # nn.Embedding default init: N(0, 1)
    codebook = jax.random.normal(k_emb, (n_e, e_dim), dtype=jnp.float32)

    z_q, loss, indices = vector_quantizer_forward(z, codebook, beta=beta)
    jax.block_until_ready((z_q, loss, indices))

    # Lightweight sanity check against a pure-JAX reference.
    zf = jnp.transpose(z, (0, 2, 3, 1)).reshape(-1, e_dim)
    d_ref = (jnp.sum(zf**2, 1, keepdims=True) + jnp.sum(codebook**2, 1)
             - 2.0 * zf @ codebook.T)
    idx_ref = jnp.argmin(d_ref, axis=1)
    zq_ref = codebook[idx_ref].reshape(B, H, W, C).transpose(0, 3, 1, 2)
    loss_ref = (1.0 + beta) * jnp.mean((zq_ref - z) ** 2)
    assert jnp.array_equal(indices.reshape(-1), idx_ref.astype(jnp.int32))
    assert jnp.allclose(z_q, zq_ref, atol=1e-5)
    assert jnp.allclose(loss, loss_ref, rtol=1e-5, atol=1e-6)

    print("KERNEL_OK")
</pallas_src>

<mosaic_0001>
module attributes {stable_mosaic.version = 11 : i64} {
  func.func @_vq_kernel(%arg0: i32, %arg1: i32, %arg2: memref<1x32x256xf32, #tpu.memory_space<vmem>>, %arg3: memref<64x33xf32, #tpu.memory_space<vmem>>, %arg4: memref<1x32x256xf32, #tpu.memory_space<vmem>>, %arg5: memref<1x1x256xi32, #tpu.memory_space<vmem>>, %arg6: memref<1x1x256xf32, #tpu.memory_space<vmem>>) attributes {dimension_semantics = [#tpu.dimension_semantics<parallel>, #tpu.dimension_semantics<parallel>], iteration_bounds = array<i64: 2, 1>, scalar_prefetch = 0 : i64, scratch_operands = 0 : i64, tpu.core_type = #tpu.core_type<tc>, window_params = [{transform_indices = @transform_0, window_bounds = array<i64: 1, 32, 256>}, {pipeline_mode = #tpu.pipeline_mode<synchronous>, transform_indices = @transform_1, window_bounds = array<i64: 64, 33>}, {transform_indices = @transform_2, window_bounds = array<i64: 1, 32, 256>}, {transform_indices = @transform_3, window_bounds = array<i64: 1, 1, 256>}, {transform_indices = @transform_4, window_bounds = array<i64: 1, 1, 256>}]} {
    %c0 = arith.constant 0 : index
    %c0_0 = arith.constant 0 : index
    %c0_1 = arith.constant 0 : index
    %0 = vector.load %arg2[%c0, %c0_0, %c0_1] : memref<1x32x256xf32, #tpu.memory_space<vmem>>, vector<1x32x256xf32>
    %1 = vector.shape_cast %0 : vector<1x32x256xf32> to vector<32x256xf32>
    %c0_2 = arith.constant 0 : index
    %c0_3 = arith.constant 0 : index
    %2 = vector.load %arg3[%c0_2, %c0_3] : memref<64x33xf32, #tpu.memory_space<vmem>>, vector<64x33xf32>
    %cst = arith.constant 1.000000e+00 : f32
    %3 = vector.broadcast %cst : f32 to vector<1x256xf32>
    %4 = tpu.concatenate %1, %3 in 0 : vector<32x256xf32>, vector<1x256xf32> -> vector<33x256xf32>
    %cst_4 = arith.constant dense<0.000000e+00> : vector<64x256xf32>
    %5 = tpu.matmul %2, %4, %cst_4 {dimension_numbers = #tpu.dot_dimension_numbers<[1], [0], [0], [1], [0, 0, 1, 1], [], []>} : vector<64x33xf32>, vector<33x256xf32>, vector<64x256xf32> -> vector<64x256xf32>
    %cst_5 = arith.constant dense<0xFF800000> : vector<256xf32>
    %6 = vector.multi_reduction <maximumf>, %5, %cst_5 [0] : vector<64x256xf32> to vector<256xf32>
    %7 = vector.shape_cast %6 : vector<256xf32> to vector<1x256xf32>
    %8 = tpu.iota {dimensions = array<i32: 0>} : vector<64x256xi32>
    %9 = vector.broadcast %7 : vector<1x256xf32> to vector<64x256xf32>
    %10 = arith.cmpf oeq, %5, %9 : vector<64x256xf32>
    %c64_i32 = arith.constant 64 : i32
    %11 = vector.broadcast %c64_i32 : i32 to vector<64x256xi32>
    %12 = arith.select %10, %8, %11 : vector<64x256xi1>, vector<64x256xi32>
    %cst_6 = arith.constant dense<2147483647> : vector<256xi32>
    %13 = vector.multi_reduction <minsi>, %12, %cst_6 [0] : vector<64x256xi32> to vector<256xi32>
    %14 = vector.shape_cast %13 : vector<256xi32> to vector<1x1x256xi32>
    %c0_7 = arith.constant 0 : index
    %c0_8 = arith.constant 0 : index
    %c0_9 = arith.constant 0 : index
    %15 = vector.load %arg5[%c0_7, %c0_8, %c0_9] : memref<1x1x256xi32, #tpu.memory_space<vmem>>, vector<1x1x256xi32>
    tpu.vector_store %arg5[%c0_7, %c0_8, %c0_9], %14 {strides = array<i32>} : memref<1x1x256xi32, #tpu.memory_space<vmem>>, vector<1x1x256xi32>,
    %16 = vector.shape_cast %13 : vector<256xi32> to vector<1x256xi32>
    %17 = vector.broadcast %16 : vector<1x256xi32> to vector<64x256xi32>
    %18 = arith.cmpi eq, %8, %17 : vector<64x256xi32>
    %19 = arith.extui %18 : vector<64x256xi1> to vector<64x256xi32>
    %20 = arith.sitofp %19 : vector<64x256xi32> to vector<64x256xf32>
    %cst_10 = arith.constant dense<0.000000e+00> : vector<33x256xf32>
    %21 = tpu.matmul %2, %20, %cst_10 {dimension_numbers = #tpu.dot_dimension_numbers<[0], [0], [1], [1], [0, 1, 1, 1], [], []>} : vector<64x33xf32>, vector<64x256xf32>, vector<33x256xf32> -> vector<33x256xf32>
    %22 = vector.extract_strided_slice %21 {offsets = [0, 0], sizes = [32, 256], strides = [1, 1]} : vector<33x256xf32> to vector<32x256xf32>
    %23 = vector.shape_cast %22 : vector<32x256xf32> to vector<1x32x256xf32>
    %c0_11 = arith.constant 0 : index
    %c0_12 = arith.constant 0 : index
    %c0_13 = arith.constant 0 : index
    %24 = vector.load %arg4[%c0_11, %c0_12, %c0_13] : memref<1x32x256xf32, #tpu.memory_space<vmem>>, vector<1x32x256xf32>
    tpu.vector_store %arg4[%c0_11, %c0_12, %c0_13], %23 {strides = array<i32>} : memref<1x32x256xf32, #tpu.memory_space<vmem>>, vector<1x32x256xf32>,
    %25 = arith.subf %22, %1 : vector<32x256xf32>
    %26 = arith.mulf %25, %25 : vector<32x256xf32>
    %cst_14 = arith.constant dense<0.000000e+00> : vector<256xf32>
    %27 = vector.multi_reduction <add>, %26, %cst_14 [0] : vector<32x256xf32> to vector<256xf32>
    %28 = vector.shape_cast %27 : vector<256xf32> to vector<1x1x256xf32>
    %c0_15 = arith.constant 0 : index
    %c0_16 = arith.constant 0 : index
    %c0_17 = arith.constant 0 : index
    %29 = vector.load %arg6[%c0_15, %c0_16, %c0_17] : memref<1x1x256xf32, #tpu.memory_space<vmem>>, vector<1x1x256xf32>
    tpu.vector_store %arg6[%c0_15, %c0_16, %c0_17], %28 {strides = array<i32>} : memref<1x1x256xf32, #tpu.memory_space<vmem>>, vector<1x1x256xf32>,
    return
  }
  func.func @transform_0(%arg0: i32, %arg1: i32) -> (i32, i32, i32) {
    %c0_i32 = arith.constant 0 : i32
    %c0_i32_0 = arith.constant 0 : i32
    return %arg0, %c0_i32, %arg1 : i32, i32, i32
  }
  func.func @transform_1(%arg0: i32, %arg1: i32) -> (i32, i32) {
    %c0_i32 = arith.constant 0 : i32
    %c0_i32_0 = arith.constant 0 : i32
    %c0_i32_1 = arith.constant 0 : i32
    return %c0_i32, %c0_i32_0 : i32, i32
  }
  func.func @transform_2(%arg0: i32, %arg1: i32) -> (i32, i32, i32) {
    %c0_i32 = arith.constant 0 : i32
    %c0_i32_0 = arith.constant 0 : i32
    return %arg0, %c0_i32, %arg1 : i32, i32, i32
  }
  func.func @transform_3(%arg0: i32, %arg1: i32) -> (i32, i32, i32) {
    %c0_i32 = arith.constant 0 : i32
    %c0_i32_0 = arith.constant 0 : i32
    return %arg0, %c0_i32, %arg1 : i32, i32, i32
  }
  func.func @transform_4(%arg0: i32, %arg1: i32) -> (i32, i32, i32) {
    %c0_i32 = arith.constant 0 : i32
    %c0_i32_0 = arith.constant 0 : i32
    return %arg0, %c0_i32, %arg1 : i32, i32, i32
  }
}

</mosaic_0001>

<bundles_post_ra>
// kernel: vector_quantizer_forward.1
= control target key start
LH: loop header
LB: loop body
LE: loop exit
PB: predicated region body
PF: predicated region fallthrough
CT: control target
= control target key end

     0   :  { %s1059_s15 = smov 0   ;;  %s1061_s16 = smov 0   ;;  %s1323_s0 = inlined_call_operand.vmem [shape: f32[2,32,256], index: 0, kind: input, shape index: {}]   ;;  %s1324_s1 = inlined_call_operand.vmem [shape: f32[64,33], index: 1, kind: input, shape index: {}]   ;;  %s1325_s2 = inlined_call_operand.vmem [shape: f32[2,32,256], index: 2, kind: output, shape index: {0}]   ;;  %s1326_s3 = inlined_call_operand.vmem [shape: s32[2,1,256], index: 3, kind: output, shape index: {1}]   ;;  %s1327_s4 = inlined_call_operand.vmem [shape: f32[2,1,256], index: 4, kind: output, shape index: {2}]  }
   0x1   :  { %s1063_s17 = smov 0  }
   0x2 LB: > { %s27_s18 = sadd.s32 1, %s1027_s16  ;;  %p912_p0 = scmp.ge.s32.totalorder %s1031_s17, 1  ;;  %s1031_s17 = sphi %s1063_s17, %s15_s17   ;;  %s1027_s16 = sphi %s1061_s16, %s1331_s16   ;;  %s1023_s15 = sphi %s1059_s15, %s1330_s15  }
   0x3   : > { %p29_p1 = scmp.ge.s32.totalorder %s27_s18, 2  ;;  %p192_p2 = scmp.lt.s32.totalorder %s1031_s17, 3 }
   0x5   : > { %s1333_s18 = smov (%p29_p1, %s27_s18), 0  ;;  %p193_p3 = pnand %p912_p0, %p192_p2 }
   0x6   : > { %p243_p4 = scmp.lt.s32.totalorder (!%p193_p3), %s1023_s15, 1 }
   0x7   : > { %196 = sbr.rel (%p193_p3) target bundleno = 445 (0x1bd), region = 28 }
   0xc   : > { %vm321_vm0 = vcmask 1040384   ;;  %v1033_v0 = vmov 1.0   ;;  %v288_v1 = vld [vmem:[%s1324_s1] sm:$0xff]  ;;  %s1335_s15 = smov (!%p243_p4, %s1023_s15), 1  ;;  %v289_v8 = vld [vmem:[%s1324_s1 + $0x8] sm:$0xff]  ;;  %vm296_vm1 = vcmask 269312   ;;  %v433_v49 = vlaneseq }
   0xd   : > { %919 = vmatpush.msk.msra.mxu0 %vm321_vm0, %v1033_v0  ;;  %928 = vmatpush.msk.msra.mxu1 %vm321_vm0, %v1033_v0  ;;  %s981_s21 = sshll.u32 %s1335_s15, 6  ;;  %v290_v11 = vld [vmem:[%s1324_s1 + $0x10] sm:$0xff]  ;;  %v291_v12 = vld [vmem:[%s1324_s1 + $0x18] sm:$0xff]  ;;  %v292_v13 = vld [vmem:[%s1324_s1 + $0x20] sm:$0xff]  ;;  %s917_s13 = sshll.u32 %s1335_s15, 1 }
   0xe   : > { %575 = vxpose.xlu0.b32.start [1/8] (short) (narrow) %v288_v1, 40  ;;  %s250_s24 = scalar_lea.vmem %s1323_s0, %s981_s21  ;;  %v293_v14 = vld [vmem:[%s1324_s1 + $0x28] sm:$0xff]  ;;  %v294_v15 = vld [vmem:[%s1324_s1 + $0x30] sm:$0xff]  ;;  %v295_v16 = vld [vmem:[%s1324_s1 + $0x38] sm:$0xff]  ;;  %v1178_v54 = vshrl.u32 %v433_v49, 7  ;;  %s269_s20 = scalar_lea.vmem %s1326_s3, %s917_s13 }
   0xf   : > { %v1092_v2 = vld [vmem:[%s250_s24 + $0x30] sm:$0xff]  ;;  %v1094_v3 = vld [vmem:[%s250_s24 + $0x38] sm:$0xff]  ;;  %v1096_v4 = vld [vmem:[%s250_s24 + $0x20] sm:$0xff]  ;;  %s278_s26 = scalar_lea.vmem %s1327_s4, %s917_s13 }
  0x10   : > { %337 = vmatpush.msra.mxu0 %v1092_v2  ;;  %378 = vmatpush.msra.mxu1 %v1094_v3  ;;  %v1100_v5 = vld [vmem:[%s250_s24 + $0x28] sm:$0xff]  ;;  %v1102_v6 = vld [vmem:[%s250_s24 + $0x10] sm:$0xff]  ;;  %v1104_v7 = vld [vmem:[%s250_s24 + $0x18] sm:$0xff]  ;;  %v1181_v59 = vadd.s32 8, %v1178_v54  ;;  %v1184_v61 = vadd.s32 16, %v1178_v54  ;;  %v1187_v62 = vadd.s32 24, %v1178_v54 }
  0x11   : > { %v1111_v9 = vld [vmem:[%s250_s24] sm:$0xff]  ;;  %v1113_v10 = vld [vmem:[%s250_s24 + $0x8] sm:$0xff]  ;;  %v1190_v63 = vadd.s32 32, %v1178_v54  ;;  %s1288_s24 = scalar_lea.vmem %s1325_s2, %s981_s21 }
  0x12   : > { %338 = vmatpush.msra.mxu0 %v1096_v4  ;;  %379 = vmatpush.msra.mxu1 %v1100_v5 }
  0x14   : > { %339 = vmatpush.msra.mxu0 %v1102_v6  ;;  %380 = vmatpush.msra.mxu1 %v1104_v7 }
  0x16   : > { %576 = vxpose.xlu0.b32.cont [2/8] (short) (narrow) %v289_v8, 40  ;;  %340 = vmatpush.msra.mxu0 %v1111_v9 }
  0x17   : > { %381 = vmatpush.msra.mxu1 %v1113_v10  ;;  %920 = vmatmul.msk.f32.vlgmr.msra.gmra.mxu0 %vm296_vm1, %v288_v1 }
  0x18   : > { %929 = vmatmul.msk.f32.vlgmr.msra.gmra.mxu1 %vm296_vm1, %v288_v1  ;;  %v1193_v1 = vadd.s32 40, %v1178_v54 }
  0x1e   : > { %577 = vxpose.xlu0.b32.cont [3/8] (short) (narrow) %v290_v11, 40 }
  0x1f   : > { %921 = vmatmul.msk.f32.gmra.mxu0 %vm296_vm1, %v289_v8 }
  0x20   : > { %930 = vmatmul.msk.f32.gmra.mxu1 %vm296_vm1, %v289_v8  ;;  %v1196_v8 = vadd.s32 48, %v1178_v54 }
  0x26   : > { %578 = vxpose.xlu0.b32.cont [4/8] (short) (narrow) %v291_v12, 40 }
  0x27   : > { %922 = vmatmul.msk.f32.gmra.mxu0 %vm296_vm1, %v290_v11 }
  0x28   : > { %931 = vmatmul.msk.f32.gmra.mxu1 %vm296_vm1, %v290_v11  ;;  %v1199_v11 = vadd.s32 56, %v1178_v54 }
  0x2e   : > { %579 = vxpose.xlu0.b32.cont [5/8] (short) (narrow) %v292_v13, 40 }
  0x2f   : > { %923 = vmatmul.msk.f32.gmra.mxu0 %vm296_vm1, %v291_v12 }
  0x30   : > { %932 = vmatmul.msk.f32.gmra.mxu1 %vm296_vm1, %v291_v12 }
  0x36   : > { %580 = vxpose.xlu0.b32.cont [6/8] (short) (narrow) %v293_v14, 40 }
  0x37   : > { %924 = vmatmul.msk.f32.gmra.mxu0 %vm296_vm1, %v292_v13 }
  0x38   : > { %933 = vmatmul.msk.f32.gmra.mxu1 %vm296_vm1, %v292_v13 }
  0x3e   : > { %581 = vxpose.xlu0.b32.cont [7/8] (short) (narrow) %v294_v15, 40 }
  0x3f   : > { %925 = vmatmul.msk.f32.gmra.mxu0 %vm296_vm1, %v293_v14 }
  0x40   : > { %934 = vmatmul.msk.f32.gmra.mxu1 %vm296_vm1, %v293_v14 }
  0x46   : > { %582 = vxpose.xlu0.b32.end [8/8] (short) (narrow) %v295_v16, 40 }
  0x47   : > { %926 = vmatmul.msk.f32.gmra.mxu0 %vm296_vm1, %v294_v15 }
  0x48   : > { %935 = vmatmul.msk.f32.gmra.mxu1 %vm296_vm1, %v294_v15 }
  0x4f   : > { %927 = vmatmul.msk.f32.gmra.mxu0 %vm296_vm1, %v295_v16 }
  0x50   : > { %936 = vmatmul.msk.f32.gmra.mxu1 %vm296_vm1, %v295_v16 }
  0x94   : > { %v342_v17 = vpop.f32.mrf.mxu0 }
  0x95   : > { %v1153_v18 = vpop.f32.mrf.mxu1 }
  0x9c   : > { %v345_v19 = vpop.f32.mrf.mxu0 }
  0x9d   : > { %v1155_v20 = vpop.f32.mrf.mxu1 }
  0xa4   : > { %v348_v21 = vpop.f32.mrf.mxu0 }
  0xa5   : > { %v1157_v22 = vpop.f32.mrf.mxu1  ;;  %v407_v31 = vmax.f32 %v342_v17, %v348_v21 }
  0xa6   : > { %v420_v32 = vmax.f32 %v1153_v18, %v1157_v22 }
  0xac   : > { %v351_v23 = vpop.f32.mrf.mxu0 }
  0xad   : > { %v1159_v24 = vpop.f32.mrf.mxu1  ;;  %v408_v33 = vmax.f32 %v345_v19, %v351_v23 }
  0xae   : > { %v421_v34 = vmax.f32 %v1155_v20, %v1159_v24 }
  0xb4   : > { %v354_v25 = vpop.f32.mrf.mxu0 }
  0xb5   : > { %v1161_v26 = vpop.f32.mrf.mxu1  ;;  %v409_v35 = vmax.f32 %v407_v31, %v354_v25 }
  0xb6   : > { %v422_v36 = vmax.f32 %v420_v32, %v1161_v26 }
  0xbc   : > { %v357_v27 = vpop.f32.mrf.mxu0 }
  0xbd   : > { %v1163_v28 = vpop.f32.mrf.mxu1  ;;  %v410_v37 = vmax.f32 %v408_v33, %v357_v27 }
  0xbe   : > { %v423_v38 = vmax.f32 %v421_v34, %v1163_v28 }
  0xc4   : > { %v360_v29 = vpop.f32.mrf.mxu0 }
  0xc5   : > { %v1165_v30 = vpop.f32.mrf.mxu1  ;;  %v411_v41 = vmax.f32 %v409_v35, %v360_v29 }
  0xc6   : > { %v424_v42 = vmax.f32 %v422_v36, %v1165_v30 }
  0xcc   : > { %v363_v39 = vpop.f32.mrf.mxu0 }
  0xcd   : > { %v1173_v40 = vpop.f32.mrf.mxu1  ;;  %v412_v43 = vmax.f32 %v410_v37, %v363_v39 }
  0xce   : > { %v425_v44 = vmax.f32 %v423_v38, %v1173_v40 }
  0xcf   : > { %v413_v45 = vmax.f32 %v411_v41, %v412_v43 }
  0xd0   : > { %v426_v46 = vmax.f32 %v424_v42, %v425_v44 }
  0xd1   : > { %v414_v47 = vrot.slane %v413_v45, 4 }
  0xd2   : > { %v427_v48 = vrot.slane %v426_v46, 4 }
  0xd3   : > { %v415_v50 = vmax.f32 %v413_v45, %v414_v47 }
  0xd4   : > { %v428_v51 = vmax.f32 %v426_v46, %v427_v48 }
  0xd5   : > { %v416_v52 = vrot.slane %v415_v50, 2 }
  0xd6   : > { %v429_v53 = vrot.slane %v428_v51, 2 }
  0xd7   : > { %v417_v55 = vmax.f32 %v415_v50, %v416_v52 }
  0xd8   : > { %v430_v56 = vmax.f32 %v428_v51, %v429_v53 }
  0xd9   : > { %v418_v57 = vrot.slane %v417_v55, 1 }
  0xda   : > { %v431_v58 = vrot.slane %v430_v56, 1 }
  0xdb   : > { %v419_v60 = vmax.f32 %v417_v55, %v418_v57  ;;  %v591_v57 = vpop.trf.xlu0 }
  0xdc   : > { %v432_v12 = vmax.f32 %v430_v56, %v431_v58 }
  0xdd   : > { %vm442_vm2 = vcmp.eq.f32.partialorder %v342_v17, %v419_v60  ;;  %vm444_vm3 = vcmp.eq.f32.partialorder %v345_v19, %v419_v60  ;;  %vm446_vm4 = vcmp.eq.f32.partialorder %v348_v21, %v419_v60  ;;  %vm448_vm5 = vcmp.eq.f32.partialorder %v351_v23, %v419_v60 }
  0xde   : > { %vm450_vm6 = vcmp.eq.f32.partialorder %v354_v25, %v419_v60  ;;  %vm452_vm7 = vcmp.eq.f32.partialorder %v357_v27, %v419_v60  ;;  %vm454_vm8 = vcmp.eq.f32.partialorder %v360_v29, %v419_v60  ;;  %vm456_vm9 = vcmp.eq.f32.partialorder %v363_v39, %v419_v60 }
  0xdf   : > { %v458_v13 = vsel %vm442_vm2, %v1178_v54, 64  ;;  %v460_v14 = vsel %vm444_vm3, %v1181_v59, 64  ;;  %v462_v15 = vsel %vm446_vm4, %v1184_v61, 64  ;;  %v464_v16 = vsel %vm448_vm5, %v1187_v62, 64 }
  0xe0   : > { %v466_v31 = vsel %vm450_vm6, %v1190_v63, 64  ;;  %v468_v32 = vsel %vm452_vm7, %v1193_v1, 64  ;;  %v470_v17 = vsel %vm454_vm8, %v1196_v8, 64  ;;  %v472_v19 = vsel %vm456_vm9, %v1199_v11, 64 }
  0xe1   : > { %vm474_vm10 = vcmp.lt.s32.totalorder %v458_v13, %v462_v15  ;;  %vm476_vm11 = vcmp.lt.s32.totalorder %v460_v14, %v464_v16  ;;  %vm443_vm12 = vcmp.eq.f32.partialorder %v1153_v18, %v432_v12  ;;  %vm445_vm13 = vcmp.eq.f32.partialorder %v1155_v20, %v432_v12 }
  0xe2   : > { %v475_v21 = vsel %vm474_vm10, %v458_v13, %v462_v15  ;;  %v477_v23 = vsel %vm476_vm11, %v460_v14, %v464_v16  ;;  %vm447_vm1 = vcmp.eq.f32.partialorder %v1157_v22, %v432_v12  ;;  %vm449_vm2 = vcmp.eq.f32.partialorder %v1159_v24, %v432_v12 }
  0xe3   : > { %vm478_vm14 = vcmp.lt.s32.totalorder %v475_v21, %v466_v31  ;;  %vm480_vm15 = vcmp.lt.s32.totalorder %v477_v23, %v468_v32  ;;  %vm451_vm3 = vcmp.eq.f32.partialorder %v1161_v26, %v432_v12  ;;  %vm453_vm4 = vcmp.eq.f32.partialorder %v1163_v28, %v432_v12 }
  0xe4   : > { %v479_v25 = vsel %vm478_vm14, %v475_v21, %v466_v31  ;;  %v481_v27 = vsel %vm480_vm15, %v477_v23, %v468_v32  ;;  %v459_v29 = vsel %vm443_vm12, %v1178_v54, 64  ;;  %v461_v18 = vsel %vm445_vm13, %v1181_v59, 64 }
  0xe5   : > { %vm482_vm5 = vcmp.lt.s32.totalorder %v479_v25, %v470_v17  ;;  %vm484_vm6 = vcmp.lt.s32.totalorder %v481_v27, %v472_v19  ;;  %v463_v34 = vsel %vm447_vm1, %v1184_v61, 64  ;;  %v465_v22 = vsel %vm449_vm2, %v1187_v62, 64 }
  0xe6   : > { %v483_v33 = vsel %vm482_vm5, %v479_v25, %v470_v17  ;;  %v485_v20 = vsel %vm484_vm6, %v481_v27, %v472_v19  ;;  %vm455_vm8 = vcmp.eq.f32.partialorder %v1165_v30, %v432_v12  ;;  %vm457_vm9 = vcmp.eq.f32.partialorder %v1173_v40, %v432_v12 }
  0xe7   : > { %vm486_vm7 = vcmp.lt.s32.totalorder %v483_v33, %v485_v20  ;;  %v467_v26 = vsel %vm451_vm3, %v1190_v63, 64  ;;  %vm497_vm10 = vcmp.lt.s32.totalorder %v459_v29, %v463_v34  ;;  %vm499_vm11 = vcmp.lt.s32.totalorder %v461_v18, %v465_v22 }
  0xe8   : > { %v487_v24 = vsel %vm486_vm7, %v483_v33, %v485_v20  ;;  %v469_v36 = vsel %vm453_vm4, %v1193_v1, 64  ;;  %v498_v37 = vsel %vm497_vm10, %v459_v29, %v463_v34  ;;  %v500_v38 = vsel %vm499_vm11, %v461_v18, %v465_v22 }
  0xe9   : > { %v488_v35 = vrot.slane %v487_v24, 4  ;;  %v471_v39 = vsel %vm455_vm8, %v1196_v8, 64  ;;  %vm501_vm12 = vcmp.lt.s32.totalorder %v498_v37, %v467_v26  ;;  %vm503_vm13 = vcmp.lt.s32.totalorder %v500_v38, %v469_v36 }
  0xea   : > { %v473_v30 = vsel %vm457_vm9, %v1199_v11, 64  ;;  %v502_v40 = vsel %vm501_vm12, %v498_v37, %v467_v26  ;;  %v504_v41 = vsel %vm503_vm13, %v500_v38, %v469_v36 }
  0xeb   : > { %vm489_vm14 = vcmp.lt.s32.totalorder %v487_v24, %v488_v35  ;;  %vm505_vm15 = vcmp.lt.s32.totalorder %v502_v40, %v471_v39  ;;  %vm507_vm1 = vcmp.lt.s32.totalorder %v504_v41, %v473_v30 }
  0xec   : > { %v490_v42 = vsel %vm489_vm14, %v487_v24, %v488_v35  ;;  %v506_v44 = vsel %vm505_vm15, %v502_v40, %v471_v39  ;;  %v508_v45 = vsel %vm507_vm1, %v504_v41, %v473_v30  ;;  %vm1247_vm15 = vcmp.lt.s32.totalorder %v433_v49, 256  ;;  %v592_v49 = vpop.trf.xlu0 }
  0xed   : > { %v491_v43 = vrot.slane %v490_v42, 2  ;;  %vm509_vm2 = vcmp.lt.s32.totalorder %v506_v44, %v508_v45 }
  0xee   : > { %v510_v28 = vsel %vm509_vm2, %v506_v44, %v508_v45 }
  0xef   : > { %vm492_vm3 = vcmp.lt.s32.totalorder %v490_v42, %v491_v43  ;;  %v511_v47 = vrot.slane %v510_v28, 4 }
  0xf0   : > { %v493_v46 = vsel %vm492_vm3, %v490_v42, %v491_v43 }
  0xf1   : > { %v494_v48 = vrot.slane %v493_v46, 1  ;;  %vm512_vm4 = vcmp.lt.s32.totalorder %v510_v28, %v511_v47 }
  0xf2   : > { %v513_v50 = vsel %vm512_vm4, %v510_v28, %v511_v47 }
  0xf3   : > { %vm495_vm5 = vcmp.lt.s32.totalorder %v493_v46, %v494_v48  ;;  %v514_v52 = vrot.slane %v513_v50, 2 }
  0xf4   : > { %v496_v51 = vsel %vm495_vm5, %v493_v46, %v494_v48  ;;  %vm607_vm5 = vcmask 523264  }
  0xf5   : > { %vm541_vm6 = vcmp.eq.s32.totalorder %v1199_v11, %v496_v51  ;;  %vm515_vm7 = vcmp.lt.s32.totalorder %v513_v50, %v514_v52  ;;  %vm539_vm8 = vcmp.eq.s32.totalorder %v1196_v8, %v496_v51  ;;  %vm537_vm9 = vcmp.eq.s32.totalorder %v1193_v1, %v496_v51 }
  0xf6   : > { %953 = vmatpush.msk.msra.mxu2 %vm541_vm6, %v1033_v0  ;;  %v516_v53 = vsel %vm515_vm7, %v513_v50, %v514_v52  ;;  %vm535_vm11 = vcmp.eq.s32.totalorder %v1190_v63, %v496_v51  ;;  %vm533_vm13 = vcmp.eq.s32.totalorder %v1187_v62, %v496_v51  ;;  %vm531_vm1 = vcmp.eq.s32.totalorder %v1184_v61, %v496_v51 }
  0xf7   : > { %v517_v55 = vrot.slane %v516_v53, 1  ;;  %vm529_vm3 = vcmp.eq.s32.totalorder %v1181_v59, %v496_v51  ;;  %vm527_vm6 = vcmp.eq.s32.totalorder %v1178_v54, %v496_v51 }
  0xf8   : > { %954 = vmatpush.msk.msra.mxu2 %vm539_vm8, %v1033_v0 }
  0xf9   : > { %vm518_vm10 = vcmp.lt.s32.totalorder %v516_v53, %v517_v55 }
  0xfa   : > { %955 = vmatpush.msk.msra.mxu2 %vm537_vm9, %v1033_v0  ;;  %v519_v56 = vsel %vm518_vm10, %v516_v53, %v517_v55 }
  0xfb   : > { %vm542_vm12 = vcmp.eq.s32.totalorder %v1199_v11, %v519_v56  ;;  %vm540_vm14 = vcmp.eq.s32.totalorder %v1196_v8, %v519_v56  ;;  %v520_v58 = vrot.slane %v519_v56, 7  ;;  %vm538_vm2 = vcmp.eq.s32.totalorder %v1193_v1, %v519_v56 }
  0xfc   : > { %956 = vmatpush.msk.msra.mxu2 %vm535_vm11, %v1033_v0  ;;  %966 = vmatpush.msk.msra.mxu3 %vm542_vm12, %v1033_v0  ;;  %vm536_vm4 = vcmp.eq.s32.totalorder %v1190_v63, %v519_v56  ;;  %vm534_vm7 = vcmp.eq.s32.totalorder %v1187_v62, %v519_v56  ;;  %vm532_vm8 = vcmp.eq.s32.totalorder %v1184_v61, %v519_v56  ;;  %v593_v62 = vpop.trf.xlu0 }
  0xfd   : > { %v521_v8 = vsel %vm321_vm0, %v496_v51, %v520_v58  ;;  %vm530_vm9 = vcmp.eq.s32.totalorder %v1181_v59, %v519_v56  ;;  %vm528_vm10 = vcmp.eq.s32.totalorder %v1178_v54, %v519_v56 }
  0xfe   : > { %957 = vmatpush.msk.msra.mxu2 %vm533_vm13, %v1033_v0  ;;  %967 = vmatpush.msk.msra.mxu3 %vm540_vm14, %v1033_v0  ;;  %526 = vst.msk [vmem:[%s269_s20] sm:$0x3] %vm1247_vm15, %v521_v8 }
 0x100   : > { %958 = vmatpush.msk.msra.mxu2 %vm531_vm1, %v1033_v0  ;;  %968 = vmatpush.msk.msra.mxu3 %vm538_vm2, %v1033_v0 }
 0x102   : > { %959 = vmatpush.msk.msra.mxu2 %vm529_vm3, %v1033_v0  ;;  %969 = vmatpush.msk.msra.mxu3 %vm536_vm4, %v1033_v0 }
 0x104   : > { %960 = vmatpush.msk.msra.mxu2 %vm527_vm6, %v1033_v0  ;;  %970 = vmatpush.msk.msra.mxu3 %vm534_vm7, %v1033_v0  ;;  %v594_v61 = vpop.trf.xlu0 }
 0x105   : > { %961 = vmatmul.msk.f32.vlgmr.msra.gmra.mxu2 %vm607_vm5, %v591_v57 }
 0x106   : > { %971 = vmatpush.msk.msra.mxu3 %vm532_vm8, %v1033_v0 }
 0x108   : > { %972 = vmatpush.msk.msra.mxu3 %vm530_vm9, %v1033_v0 }
 0x10a   : > { %973 = vmatpush.msk.msra.mxu3 %vm528_vm10, %v1033_v0 }
 0x10b   : > { %974 = vmatmul.msk.f32.vlgmr.msra.gmra.mxu3 %vm607_vm5, %v591_v57 }
 0x10c   : > { %v595_v59 = vpop.trf.xlu0 }
 0x10d   : > { %962 = vmatmul.msk.f32.gmra.mxu2 %vm607_vm5, %v592_v49 }
 0x113   : > { %975 = vmatmul.msk.f32.gmra.mxu3 %vm607_vm5, %v592_v49 }
 0x115   : > { %963 = vmatmul.msk.f32.gmra.mxu2 %vm607_vm5, %v593_v62 }
 0x11b   : > { %976 = vmatmul.msk.f32.gmra.mxu3 %vm607_vm5, %v593_v62 }
 0x11d   : > { %964 = vmatmul.msk.f32.gmra.mxu2 %vm607_vm5, %v594_v61 }
 0x123   : > { %977 = vmatmul.msk.f32.gmra.mxu3 %vm607_vm5, %v594_v61 }
 0x125   : > { %965 = vmatmul.msk.f32.gmra.mxu2 %vm607_vm5, %v595_v59 }
 0x12b   : > { %978 = vmatmul.msk.f32.gmra.mxu3 %vm607_vm5, %v595_v59 }
 0x188   : > { %v640_v0 = vpop.f32.mrf.mxu2 }
 0x189   : > { %685 = vst [vmem:[%s1288_s24] sm:$0xff] %v640_v0  ;;  %v693_v13 = vsub.f32 %v640_v0, %v1111_v9 }
 0x18b   : > { %v701_v16 = vmul.f32 %v693_v13, %v693_v13 }
 0x18e   : > { %v671_v54 = vpop.f32.mrf.mxu3 }
 0x18f   : > { %686 = vst [vmem:[%s1288_s24 + $0x8] sm:$0xff] %v671_v54 }
 0x190   : > { %v643_v63 = vpop.f32.mrf.mxu2 }
 0x191   : > { %687 = vst [vmem:[%s1288_s24 + $0x10] sm:$0xff] %v643_v63  ;;  %v695_v12 = vsub.f32 %v643_v63, %v1102_v6  ;;  %v694_v6 = vsub.f32 %v671_v54, %v1113_v10 }
 0x193   : > { %v703_v15 = vmul.f32 %v695_v12, %v695_v12  ;;  %v702_v18 = vmul.f32 %v694_v6, %v694_v6 }
 0x195   : > { %v709_v21 = vadd.f32 %v703_v15, %v701_v16 }
 0x196   : > { %v674_v1 = vpop.f32.mrf.mxu3 }
 0x197   : > { %688 = vst [vmem:[%s1288_s24 + $0x18] sm:$0xff] %v674_v1  ;;  %v696_v17 = vsub.f32 %v674_v1, %v1104_v7 }
 0x198   : > { %v646_v11 = vpop.f32.mrf.mxu2 }
 0x199   : > { %689 = vst [vmem:[%s1288_s24 + $0x20] sm:$0xff] %v646_v11  ;;  %v697_v14 = vsub.f32 %v646_v11, %v1096_v4  ;;  %v704_v4 = vmul.f32 %v696_v17, %v696_v17 }
 0x19b   : > { %v705_v31 = vmul.f32 %v697_v14, %v697_v14  ;;  %v718_v7 = vadd.f32 %v704_v4, %v702_v18 }
 0x19d   : > { %v710_v9 = vadd.f32 %v709_v21, %v705_v31 }
 0x19e   : > { %v677_v32 = vpop.f32.mrf.mxu3 }
 0x19f   : > { %690 = vst [vmem:[%s1288_s24 + $0x28] sm:$0xff] %v677_v32  ;;  %v698_v25 = vsub.f32 %v677_v32, %v1100_v5 }
 0x1a0   : > { %v649_v19 = vpop.f32.mrf.mxu2 }
 0x1a1   : > { %691 = vst [vmem:[%s1288_s24 + $0x30] sm:$0xff] %v649_v19  ;;  %v699_v23 = vsub.f32 %v649_v19, %v1092_v2  ;;  %v706_v33 = vmul.f32 %v698_v25, %v698_v25 }
 0x1a3   : > { %v707_v27 = vmul.f32 %v699_v23, %v699_v23  ;;  %v719_v26 = vadd.f32 %v718_v7, %v706_v33 }
 0x1a5   : > { %v711_v29 = vadd.f32 %v710_v9, %v707_v27 }
 0x1a6   : > { %v680_v34 = vpop.f32.mrf.mxu3 }
 0x1a7   : > { %v712_v20 = vrot.slane %v711_v29, 4  ;;  %692 = vst [vmem:[%s1288_s24 + $0x38] sm:$0xff] %v680_v34  ;;  %v700_v22 = vsub.f32 %v680_v34, %v1094_v3 }
 0x1a8   : > { %v652_v24 = vpop.f32.mrf.mxu2 }
 0x1a9   : > { %v713_v2 = vadd.f32 %v712_v20, %v711_v29  ;;  %v708_v35 = vmul.f32 %v700_v22, %v700_v22 }
 0x1ab   : > { %v720_v10 = vadd.f32 %v719_v26, %v708_v35  ;;  %v714_v36 = vrot.slane %v713_v2, 2 }
 0x1ad   : > { %v721_v5 = vrot.slane %v720_v10, 4  ;;  %v715_v39 = vadd.f32 %v714_v36, %v713_v2 }
 0x1ae   : > { %v683_v37 = vpop.f32.mrf.mxu3 }
 0x1af   : > { %v722_v38 = vadd.f32 %v721_v5, %v720_v10  ;;  %v716_v41 = vrot.slane %v715_v39, 1 }
 0x1b1   : > { %v723_v30 = vrot.slane %v722_v38, 2  ;;  %v717_v44 = vadd.f32 %v716_v41, %v715_v39 }
 0x1b3   : > { %v724_v40 = vadd.f32 %v723_v30, %v722_v38 }
 0x1b5   : > { %v725_v42 = vrot.slane %v724_v40, 1 }
 0x1b7   : > { %v726_v43 = vadd.f32 %v725_v42, %v724_v40 }
 0x1b9   : > { %v729_v3 = vrot.slane %v726_v43, 7 }
 0x1bb   : > { %v730_v45 = vsel %vm321_vm0, %v717_v44, %v729_v3 }
 0x1bc   : > { %732 = vst.msk [vmem:[%s278_s26] sm:$0x3] %vm1247_vm15, %v730_v45 }
 0x1bd PF: > { %s15_s17 = sadd.s32 1, %s1031_s17   ;;  %s1330_s15 = smov %s1027_s16 }
 0x1be   : > { %p12_p5 = scmp.ge.s32.totalorder %s15_s17, 4   ;;  %s1331_s16 = smov %s1333_s18 }
 0x1c0   :  { %14 = sbr.rel (!%p12_p5) target bundleno = 2 (0x2), region = 82 }

</bundles_post_ra>
